<compile_context>
chip_gen: v6e
topology: v6e:2x2x1
jax: 0.10.0
libtpu: 0.0.40
codegen_flags: <defaults>
</compile_context>

<pallas_src>
import functools

import jax
import jax.numpy as jnp
from jax.experimental import pallas as pl
from jax.experimental.pallas import tpu as pltpu


def _kl_llp_kernel(pred_ref, t_ref, out_ref, acc_dot_ref, acc_lse_ref, *,
                   n_rows, block_rows):
    # pred_ref   : (TM, C) VMEM tile of logits
    # t_ref      : (1, C)  VMEM target proportions (resident, constant index_map)
    # out_ref    : (1, 1)  SMEM scalar output
    # acc_*_ref  : (1, 1)  f32 VMEM scratch accumulators (persist across grid)
    i = pl.program_id(0)

    @pl.when(i == 0)
    def _init():
        acc_dot_ref[...] = jnp.zeros_like(acc_dot_ref)
        acc_lse_ref[...] = jnp.zeros_like(acc_lse_ref)

    pred = pred_ref[...].astype(jnp.float32)                    # (TM, C)
    t = t_ref[...].astype(jnp.float32)                          # (1, C)

    # Mask rows that fall past the true batch size (partial last tile).
    row_ids = i * block_rows + jax.lax.broadcasted_iota(
        jnp.int32, (block_rows, 1), 0)                          # (TM, 1)
    valid = row_ids < n_rows                                    # (TM, 1) bool
    pred = jnp.where(valid, pred, 0.0)                          # padded rows -> 0

    # Per-row stable logsumexp over the class (lane) axis.
    m = jnp.max(pred, axis=1, keepdims=True)                    # (TM, 1)
    lse = jnp.log(jnp.sum(jnp.exp(pred - m), axis=1, keepdims=True)) + m
    lse = jnp.where(valid, lse, 0.0)                            # drop padded rows

    # Per-row t . pred  (padded rows are already zero).
    row_dot = jnp.sum(pred * t, axis=1, keepdims=True)          # (TM, 1)

    acc_dot_ref[...] += jnp.sum(row_dot, axis=0, keepdims=True)  # (1,1)
    acc_lse_ref[...] += jnp.sum(lse, axis=0, keepdims=True)      # (1,1)

    @pl.when(i == pl.num_programs(0) - 1)
    def _finalize():
        num_classes = t.shape[-1]
        t_sum = jnp.sum(t, axis=1, keepdims=True)                           # (1,1)
        tlogt = jnp.where(t > 0.0,
                          t * jnp.log(jnp.where(t > 0.0, t, 1.0)), 0.0)     # xlogy
        tlogt_sum = jnp.sum(tlogt, axis=1, keepdims=True)                   # (1,1)
        batch_dot = (acc_dot_ref[...] - acc_lse_ref[...] * t_sum) / jnp.float32(n_rows)
        loss = (tlogt_sum - batch_dot) / jnp.float32(num_classes)           # (1,1)
        out_ref[0, 0] = loss[0, 0]


def kl_loss_llp(pred: jax.Array, target: jax.Array, *, block_rows=None) -> jax.Array:
    """pred: (N, C) logits; target: (C,) proportions. Returns scalar f32."""
    n, c = pred.shape
    target2d = target.reshape(1, c).astype(jnp.float32)

    itemsize = jnp.dtype(pred.dtype).itemsize
    # Sublane multiple required for a non-full block along the second-to-last dim.
    sub = {4: 8, 2: 16, 1: 32}.get(itemsize, 8)

    if block_rows is None:
        # ~4 MiB per pred buffer (8 MiB double-buffered): safe on v5e/v6e/v7x.
        budget = 4 * 1024 * 1024
        block_rows = max(sub, (budget // (c * itemsize)) // sub * sub)
        block_rows = min(block_rows, 1024)
    # Round up to the sublane multiple, then cap at N (a full-dim block is
    # always legal regardless of divisibility).
    block_rows = max(sub, -(-block_rows // sub) * sub)
    block_rows = min(block_rows, n)

    grid_steps = -(-n // block_rows)

    vmem_needed = (2 * block_rows * c * itemsize   # double-buffered pred tile
                   + 2 * c * 4                     # target tile
                   + 4 * 1024)                     # scratch + slack
    vmem_limit = int(max(vmem_needed + (2 << 20), 16 * 1024 * 1024))

    kernel = functools.partial(_kl_llp_kernel, n_rows=n, block_rows=block_rows)

    out = pl.pallas_call(
        kernel,
        out_shape=jax.ShapeDtypeStruct((1, 1), jnp.float32),
        grid=(grid_steps,),
        in_specs=[
            pl.BlockSpec((block_rows, c), lambda i: (i, 0)),
            pl.BlockSpec((1, c), lambda i: (0, 0)),
        ],
        out_specs=pl.BlockSpec(memory_space=pltpu.SMEM),
        scratch_shapes=[pltpu.VMEM((1, 1), jnp.float32),
                        pltpu.VMEM((1, 1), jnp.float32)],
        compiler_params=pltpu.CompilerParams(
            dimension_semantics=("arbitrary",),
            vmem_limit_bytes=vmem_limit,
        ),
    )(pred, target2d)
    return out[0, 0]


def _reference(pred, target):
    # Plain-JAX reference mirroring the PyTorch module exactly.
    logp = jax.nn.log_softmax(pred.astype(jnp.float32), axis=1)
    batch_avg = jnp.mean(logp, axis=0)
    t = target.astype(jnp.float32)
    tlogt = jnp.where(t > 0.0, t * jnp.log(jnp.where(t > 0.0, t, 1.0)), 0.0)
    pointwise = tlogt - t * batch_avg
    return jnp.sum(pointwise) / t.shape[0]


if __name__ == "__main__":
    key = jax.random.PRNGKey(0)
    k_pred, k_tgt = jax.random.split(key)

    N, C = 300, 128  # N deliberately not a multiple of the tile -> partial tile path
    pred = jax.random.normal(k_pred, (N, C), dtype=jnp.float32)
    # target: valid probability vector (bag label proportions)
    target = jax.nn.softmax(jax.random.normal(k_tgt, (C,), dtype=jnp.float32))

    ref = _reference(pred, target)

    # 1) Tiled path: 3 grid steps, masked partial last tile.
    loss_tiled = kl_loss_llp(pred, target, block_rows=128)
    jax.block_until_ready(loss_tiled)
    assert jnp.allclose(loss_tiled, ref, rtol=1e-4, atol=1e-5), (loss_tiled, ref)

    # 2) Default tile choice (single full-dim block here).
    loss_default = kl_loss_llp(pred, target)
    jax.block_until_ready(loss_default)
    assert jnp.allclose(loss_default, ref, rtol=1e-4, atol=1e-5), (loss_default, ref)

    # 3) bf16 logits stay bf16 on the HBM wire; upcast happens in-register.
    pred_bf16 = pred.astype(jnp.bfloat16)
    ref_bf16 = _reference(pred_bf16, target)
    loss_bf16 = kl_loss_llp(pred_bf16, target, block_rows=64)
    jax.block_until_ready(loss_bf16)
    assert jnp.allclose(loss_bf16, ref_bf16, rtol=1e-4, atol=1e-5), (loss_bf16, ref_bf16)

    print("KERNEL_OK")
</pallas_src>

<mosaic_0001>
module attributes {stable_mosaic.version = 11 : i64} {
  func.func @_kl_llp_kernel(%arg0: i32, %arg1: memref<128x128xf32, #tpu.memory_space<vmem>>, %arg2: memref<1x128xf32, #tpu.memory_space<vmem>>, %arg3: memref<1x1xf32, #tpu.memory_space<smem>>, %arg4: memref<1x1xf32, #tpu.memory_space<vmem>>, %arg5: memref<1x1xf32, #tpu.memory_space<vmem>>) attributes {dimension_semantics = [#tpu.dimension_semantics<arbitrary>], iteration_bounds = array<i64: 3>, scalar_prefetch = 0 : i64, scratch_operands = 2 : i64, tpu.core_type = #tpu.core_type<tc>, window_params = [{transform_indices = @transform_0, window_bounds = array<i64: 128, 128>}, {pipeline_mode = #tpu.pipeline_mode<synchronous>, transform_indices = @transform_1, window_bounds = array<i64: 1, 128>}, {transform_indices = @transform_2, window_bounds = array<i64: 1, 1>}]} {
    %c0_i32 = arith.constant 0 : i32
    %0 = arith.cmpi eq, %arg0, %c0_i32 : i32
    %1 = arith.extui %0 : i1 to i32
    %c0_i32_0 = arith.constant 0 : i32
    %2 = arith.cmpi ne, %1, %c0_i32_0 : i32
    scf.if %2 {
      %cst_19 = arith.constant 0.000000e+00 : f32
      %43 = vector.broadcast %cst_19 : f32 to vector<1x1xf32>
      %c0_20 = arith.constant 0 : index
      %c0_21 = arith.constant 0 : index
      %44 = vector.load %arg4[%c0_20, %c0_21] : memref<1x1xf32, #tpu.memory_space<vmem>>, vector<1x1xf32>
      tpu.vector_store %arg4[%c0_20, %c0_21], %43 {strides = array<i32>} : memref<1x1xf32, #tpu.memory_space<vmem>>, vector<1x1xf32>,
      %cst_22 = arith.constant 0.000000e+00 : f32
      %45 = vector.broadcast %cst_22 : f32 to vector<1x1xf32>
      %c0_23 = arith.constant 0 : index
      %c0_24 = arith.constant 0 : index
      %46 = vector.load %arg5[%c0_23, %c0_24] : memref<1x1xf32, #tpu.memory_space<vmem>>, vector<1x1xf32>
      tpu.vector_store %arg5[%c0_23, %c0_24], %45 {strides = array<i32>} : memref<1x1xf32, #tpu.memory_space<vmem>>, vector<1x1xf32>,
    } else {
    }
    %c0 = arith.constant 0 : index
    %c0_1 = arith.constant 0 : index
    %3 = vector.load %arg1[%c0, %c0_1] : memref<128x128xf32, #tpu.memory_space<vmem>>, vector<128x128xf32>
    %c0_2 = arith.constant 0 : index
    %c0_3 = arith.constant 0 : index
    %4 = vector.load %arg2[%c0_2, %c0_3] : memref<1x128xf32, #tpu.memory_space<vmem>>, vector<1x128xf32>
    %c128_i32 = arith.constant 128 : i32
    %5 = arith.muli %arg0, %c128_i32 : i32
    %6 = tpu.iota {dimensions = array<i32: 0>} : vector<128x1xi32>
    %7 = vector.broadcast %5 : i32 to vector<128x1xi32>
    %8 = arith.addi %7, %6 : vector<128x1xi32>
    %c300_i32 = arith.constant 300 : i32
    %9 = vector.broadcast %c300_i32 : i32 to vector<128x1xi32>
    %10 = arith.cmpi slt, %8, %9 : vector<128x1xi32>
    %cst = arith.constant 0.000000e+00 : f32
    %11 = vector.shape_cast %10 : vector<128x1xi1> to vector<128x1xi1>
    %12 = vector.broadcast %11 : vector<128x1xi1> to vector<128x128xi1>
    %13 = vector.broadcast %cst : f32 to vector<128x128xf32>
    %14 = arith.select %12, %3, %13 : vector<128x128xi1>, vector<128x128xf32>
    %cst_4 = arith.constant dense<0xFF800000> : vector<128xf32>
    %15 = vector.multi_reduction <maximumf>, %14, %cst_4 [1] : vector<128x128xf32> to vector<128xf32>
    %16 = vector.shape_cast %15 : vector<128xf32> to vector<128x1xf32>
    %17 = vector.broadcast %16 : vector<128x1xf32> to vector<128x128xf32>
    %18 = arith.subf %14, %17 : vector<128x128xf32>
    %19 = math.exp %18 : vector<128x128xf32>
    %cst_5 = arith.constant dense<0.000000e+00> : vector<128xf32>
    %20 = vector.multi_reduction <add>, %19, %cst_5 [1] : vector<128x128xf32> to vector<128xf32>
    %21 = vector.shape_cast %20 : vector<128xf32> to vector<128x1xf32>
    %22 = math.log %21 : vector<128x1xf32>
    %23 = arith.addf %22, %16 : vector<128x1xf32>
    %cst_6 = arith.constant 0.000000e+00 : f32
    %24 = vector.broadcast %cst_6 : f32 to vector<128x1xf32>
    %25 = arith.select %10, %23, %24 : vector<128x1xi1>, vector<128x1xf32>
    %26 = vector.broadcast %4 : vector<1x128xf32> to vector<128x128xf32>
    %27 = arith.mulf %14, %26 : vector<128x128xf32>
    %cst_7 = arith.constant dense<0.000000e+00> : vector<128xf32>
    %28 = vector.multi_reduction <add>, %27, %cst_7 [1] : vector<128x128xf32> to vector<128xf32>
    %29 = vector.shape_cast %28 : vector<128xf32> to vector<128x1xf32>
    %c0_8 = arith.constant 0 : index
    %c0_9 = arith.constant 0 : index
    %30 = vector.load %arg4[%c0_8, %c0_9] : memref<1x1xf32, #tpu.memory_space<vmem>>, vector<1x1xf32>
    %cst_10 = arith.constant dense<0.000000e+00> : vector<1xf32>
    %31 = vector.multi_reduction <add>, %29, %cst_10 [0] : vector<128x1xf32> to vector<1xf32>
    %32 = vector.shape_cast %31 : vector<1xf32> to vector<1x1xf32>
    %33 = arith.addf %30, %32 : vector<1x1xf32>
    %c0_11 = arith.constant 0 : index
    %c0_12 = arith.constant 0 : index
    %34 = vector.load %arg4[%c0_11, %c0_12] : memref<1x1xf32, #tpu.memory_space<vmem>>, vector<1x1xf32>
    tpu.vector_store %arg4[%c0_11, %c0_12], %33 {strides = array<i32>} : memref<1x1xf32, #tpu.memory_space<vmem>>, vector<1x1xf32>,
    %c0_13 = arith.constant 0 : index
    %c0_14 = arith.constant 0 : index
    %35 = vector.load %arg5[%c0_13, %c0_14] : memref<1x1xf32, #tpu.memory_space<vmem>>, vector<1x1xf32>
    %cst_15 = arith.constant dense<0.000000e+00> : vector<1xf32>
    %36 = vector.multi_reduction <add>, %25, %cst_15 [0] : vector<128x1xf32> to vector<1xf32>
    %37 = vector.shape_cast %36 : vector<1xf32> to vector<1x1xf32>
    %38 = arith.addf %35, %37 : vector<1x1xf32>
    %c0_16 = arith.constant 0 : index
    %c0_17 = arith.constant 0 : index
    %39 = vector.load %arg5[%c0_16, %c0_17] : memref<1x1xf32, #tpu.memory_space<vmem>>, vector<1x1xf32>
    tpu.vector_store %arg5[%c0_16, %c0_17], %38 {strides = array<i32>} : memref<1x1xf32, #tpu.memory_space<vmem>>, vector<1x1xf32>,
    %c2_i32 = arith.constant 2 : i32
    %40 = arith.cmpi eq, %arg0, %c2_i32 : i32
    %41 = arith.extui %40 : i1 to i32
    %c0_i32_18 = arith.constant 0 : i32
    %42 = arith.cmpi ne, %41, %c0_i32_18 : i32
    scf.if %42 {
      %cst_19 = arith.constant dense<0.000000e+00> : vector<1xf32>
      %43 = vector.multi_reduction <add>, %4, %cst_19 [1] : vector<1x128xf32> to vector<1xf32>
      %44 = vector.shape_cast %43 : vector<1xf32> to vector<1x1xf32>
      %cst_20 = arith.constant 0.000000e+00 : f32
      %45 = vector.broadcast %cst_20 : f32 to vector<1x128xf32>
      %46 = arith.cmpf ogt, %4, %45 : vector<1x128xf32>
      %cst_21 = arith.constant 0.000000e+00 : f32
      %47 = vector.broadcast %cst_21 : f32 to vector<1x128xf32>
      %48 = arith.cmpf ogt, %4, %47 : vector<1x128xf32>
      %cst_22 = arith.constant 1.000000e+00 : f32
      %49 = vector.broadcast %cst_22 : f32 to vector<1x128xf32>
      %50 = arith.select %48, %4, %49 : vector<1x128xi1>, vector<1x128xf32>
      %51 = math.log %50 : vector<1x128xf32>
      %52 = arith.mulf %4, %51 : vector<1x128xf32>
      %cst_23 = arith.constant 0.000000e+00 : f32
      %53 = vector.broadcast %cst_23 : f32 to vector<1x128xf32>
      %54 = arith.select %46, %52, %53 : vector<1x128xi1>, vector<1x128xf32>
      %cst_24 = arith.constant dense<0.000000e+00> : vector<1xf32>
      %55 = vector.multi_reduction <add>, %54, %cst_24 [1] : vector<1x128xf32> to vector<1xf32>
      %56 = vector.shape_cast %55 : vector<1xf32> to vector<1x1xf32>
      %c0_25 = arith.constant 0 : index
      %c0_26 = arith.constant 0 : index
      %57 = vector.load %arg4[%c0_25, %c0_26] : memref<1x1xf32, #tpu.memory_space<vmem>>, vector<1x1xf32>
      %c0_27 = arith.constant 0 : index
      %c0_28 = arith.constant 0 : index
      %58 = vector.load %arg5[%c0_27, %c0_28] : memref<1x1xf32, #tpu.memory_space<vmem>>, vector<1x1xf32>
      %59 = arith.mulf %58, %44 : vector<1x1xf32>
      %60 = arith.subf %57, %59 : vector<1x1xf32>
      %cst_29 = arith.constant 3.000000e+02 : f32
      %61 = vector.broadcast %cst_29 : f32 to vector<1x1xf32>
      %62 = arith.divf %60, %61 : vector<1x1xf32>
      %63 = arith.subf %56, %62 : vector<1x1xf32>
      %cst_30 = arith.constant 1.280000e+02 : f32
      %64 = vector.broadcast %cst_30 : f32 to vector<1x1xf32>
      %65 = arith.divf %63, %64 : vector<1x1xf32>
      %66 = vector.extract %65[0, 0] : f32 from vector<1x1xf32>
      %c0_31 = arith.constant 0 : index
      %c0_32 = arith.constant 0 : index
      %67 = memref.load %arg3[%c0_31, %c0_32] : memref<1x1xf32, #tpu.memory_space<smem>>
      memref.store %66, %arg3[%c0_31, %c0_32] : memref<1x1xf32, #tpu.memory_space<smem>>
    } else {
    }
    return
  }
  func.func @transform_0(%arg0: i32) -> (i32, i32) {
    %c0_i32 = arith.constant 0 : i32
    %c0_i32_0 = arith.constant 0 : i32
    return %arg0, %c0_i32 : i32, i32
  }
  func.func @transform_1(%arg0: i32) -> (i32, i32) {
    %c0_i32 = arith.constant 0 : i32
    %c0_i32_0 = arith.constant 0 : i32
    %c0_i32_1 = arith.constant 0 : i32
    return %c0_i32, %c0_i32_0 : i32, i32
  }
  func.func @transform_2(%arg0: i32) -> (i32, i32) {
    %c0_i32 = arith.constant 0 : i32
    %c0_i32_0 = arith.constant 0 : i32
    %c0_i32_1 = arith.constant 0 : i32
    return %c0_i32, %c0_i32_0 : i32, i32
  }
}

</mosaic_0001>

<bundles_post_ra>
// kernel: tpu_custom_call.1
= control target key start
LH: loop header
LB: loop body
LE: loop exit
PB: predicated region body
PF: predicated region fallthrough
CT: control target
= control target key end

     0   :  { %7 = vsyncpa [#allocation5], 0  ;;  %s1328_s0 = inlined_call_operand.hbm [shape: f32[300,128], index: 0, kind: input, shape index: {}]   ;;  %s1329_s1 = inlined_call_operand.vmem [shape: f32[1,128], index: 1, kind: input, shape index: {}]   ;;  %s1330_s2 = inlined_call_operand.hbm [shape: f32[1,1], index: 2, kind: output, shape index: {}]  }
   0x1   :  { %9 = vsyncpa [#allocation5 + $0x1], 0 }
   0x2   :  { %10 = vsyncpa [#allocation6], 0  ;;  %s875_s9 = smov 0   ;;  %s877_s10 = smov 0  }
   0x3   :  { %s879_s11 = smov 0   ;;  %s881_s12 = smov 0  }
   0x4 LB: > { %s894_s13 = sadd.s32 4294967295, %s853_s12   ;;  %s897_s14 = sadd.s32 1, %s853_s12   ;;  %s853_s12 = sphi %s881_s12, %s1335_s12   ;;  %s849_s11 = sphi %s879_s11, %s1334_s11   ;;  %s845_s10 = sphi %s877_s10, %s1333_s10   ;;  %s841_s9 = sphi %s875_s9, %s1332_s9  }
   0x5   : > { %s20_s15 = ssub.s32 %s853_s12, %s897_s14  ;;  %s23_s16 = sadd.s32 1, %s849_s11 }
   0x6   : > { %p21_p0 = scmp.eq.s32.totalorder %s20_s15, 0  ;;  %p30_p1 = scmp.ne.s32.totalorder %s849_s11, %s845_s10 }
   0x7   : > { %p31_p2 = scmp.eq.s32.totalorder %s853_s12, 0  ;;  %p36_p3 = scmp.ne.s32.totalorder %s845_s10, %s841_s9 }
   0x8   : > { %s907_s17 = scalar_select %p21_p0, %s849_s11, %s23_s16  }
   0x9   : > { %p32_p4 = por %p31_p2, %p30_p1  ;;  %p37_p5 = scmp.eq.s32.totalorder %s894_s13, 0 }
   0xa   : > { %p650_p7 = scmp.ge.s32.totalorder %s853_s12, 3 }
   0xb   : > { %p910_p6 = por %p37_p5, %p36_p3 }
   0xc   : > { %101 = sbr.rel (%p650_p7) target bundleno = 49 (0x31), region = 20 }
  0x11   : > { %104 = sbr.rel (!%p32_p4) target bundleno = 49 (0x31), region = 24  ;;  %s105_s19 = sand.u32 (%p32_p4), 1, %s849_s11  }
  0x12   : > { %s652_s20 = sshll.u32 (%p32_p4), %s853_s12, 4  ;;  %s651_s21 = sshll.u32 (%p32_p4), %s105_s19, 7 }
  0x13   : > { %s111_s22 = ssub.s32 (%p32_p4), 38, %s652_s20  ;;  %s920_s25 = scalar_lea.sflag (%p32_p4), [#allocation5], %s105_s19 }
  0x14   : > { %p112_p8 = scmp.lt.s32.totalorder (%p32_p4), %s111_s22, 16  ;;  %s109_s26 = scalar_lea.vmem (%p32_p4), [#allocation4], %s651_s21 }
  0x16   : > { %s1337_s22 = smov (!%p112_p8, %s111_s22), 16 }
  0x17   : > { %s917_s23 = sshll.u32 %s1337_s22, 7 }
  0x18   : > { %s116_s24 = ssub.s32 2048, %s917_s23 }
  0x19   : > { %117 = vsyncadd %s920_s25, %s116_s24  ;;  %p654_p9 = scmp.ne.s32.totalorder %s917_s23, 0  ;;  %s667_s27 = sshll.u32 %s853_s12, 11 }
  0x1a   : > { %s928_s30 = scalar_lea.hbm %s1328_s0, %s667_s27  ;;  %s122_s3 = sshll.u32 %s109_s26, 4  ;;  %s930_s3 = int_to_ptr.vmem [resolvable:$true] %s122_s3 }
  0x1b   : > { %s779_s4 = scalar_lea.hbm %s928_s30, %s917_s23  ;;  %s783_s7 = scalar_lea.hbm %s1328_s0, 4864 }
  0x1c   : > { %p780_p10 = scmp.ne.s32.totalorder %s928_s30, %s779_s4  ;;  %p784_p13 = scmp.lt.s32.totalorder %s928_s30, %s1328_s0 }
  0x1d   : > { %p785_p0 = scmp.lt.s32.totalorder %s783_s7, %s779_s4 }
  0x1e   : > { %p781_p11 = pnand %p780_p10, %p654_p9 }
  0x1f   : > { %p786_p1 = por %p785_p0, %p784_p13 }
  0x20   : > { %p782_p12 = pneg %p781_p11 }
  0x22   : > { %p787_p2 = pnand %p786_p1, %p782_p12 }
  0x24   : > { %790 = shalt.err (!%p787_p2)
}
  0x25   : > { %s791_s15 = scalar_lea.vmem %s930_s3, %s917_s23  ;;  %s855_s16 = smov [#allocation4]  }
  0x26   : > { %p792_p3 = scmp.ne.s32.totalorder %s930_s3, %s791_s15  ;;  %s795_s19 = sshll.u32 %s855_s16, 4  ;;  %s796_s19 = int_to_ptr.vmem [resolvable:$false] %s795_s19 }
  0x27   : > { %s797_s20 = scalar_lea.vmem %s796_s19, 4096  ;;  %p798_p7 = scmp.lt.s32.totalorder %s930_s3, %s796_s19 }
  0x28   : > { %p793_p4 = pnand %p792_p3, %p654_p9  ;;  %p799_p8 = scmp.lt.s32.totalorder %s797_s20, %s791_s15 }
  0x2a   : > { %p794_p5 = pneg %p793_p4  ;;  %p800_p10 = por %p799_p8, %p798_p7 }
  0x2c   : > { %p801_p11 = pnand %p800_p10, %p794_p5 }
  0x2e   : > { %804 = shalt.err (!%p801_p11)
}
  0x2f   : > { %s856_s21 = smov 128   ;;  %s857_s22 = smov 8  }
  0x30   : > { %128 = dma.hbm_to_vmem [thread:$0]  (%p654_p9), %s928_s30, %s917_s23, %s930_s3, %s920_s25, %s856_s21, %s856_s21, %s857_s22  }
  0x31 PF: > { %p658_p12 = scmp.ge.s32.totalorder %s853_s12, 1  ;;  %p130_p13 = scmp.lt.s32.totalorder %s853_s12, 4 }
  0x33   : > { %p131_p0 = pnand %p658_p12, %p130_p13 }
  0x34   : > { %s136_s24 = sand.u32 (!%p131_p0), 1, %s845_s10  }
  0x35   : > { %134 = sbr.rel (%p131_p0) target bundleno = 668 (0x29c), region = 28  ;;  %s659_s26 = sshll.u32 (!%p131_p0), %s136_s24, 7 }
  0x36   : > { %s137_s27 = scalar_lea.sflag (!%p131_p0), [#allocation5], %s136_s24  ;;  %s959_s28 = scalar_lea.vmem (!%p131_p0), [#allocation4], %s659_s26 }
  0x3a   : > { %832 = dma.done.wait (%p910_p6), %s137_s27, 2048  }
  0x3b   : > { %834 = vsyncadd (%p910_p6), %s137_s27, 4294965248  ;;  %p660_p9 = scmp.ne.s32.totalorder %s894_s13, 0 }
  0x3d   : > { %164 = sbr.rel (%p660_p9) target bundleno = 68 (0x44), region = 36 }
  0x42   : > { %vm165_vm0 = vcmask 0   ;;  %v858_v0 = vmov 0.0  }
  0x43   : > { %166 = vst.msk [vmem:[#allocation2] sm:$0x1] %vm165_vm0, %v858_v0  ;;  %167 = vst.msk [vmem:[#allocation3] sm:$0x1] %vm165_vm0, %v858_v0 }
  0x44 PF: > { %s661_s12 = sshll.u32 %s894_s13, 7  ;;  %v186_v1 = vlaneseq  ;;  %v168_v4 = vld [vmem:[%s959_s28] sm:$0xff]  ;;  %v170_v12 = vld [vmem:[%s959_s28 + $0x10] sm:$0xff]  ;;  %v169_v14 = vld [vmem:[%s959_s28 + $0x8] sm:$0xff]  ;;  %p662_p6 = scmp.ne.s32.totalorder %s894_s13, 2 }
  0x45   : > { %v967_v2 = vstv %s661_s12  ;;  %v171_v20 = vld [vmem:[%s959_s28 + $0x18] sm:$0xff]  ;;  %v172_v24 = vld [vmem:[%s959_s28 + $0x20] sm:$0xff]  ;;  %v173_v28 = vld [vmem:[%s959_s28 + $0x28] sm:$0xff] }
  0x46   : > { %v969_v3 = vshrl.u32 %v186_v1, 7  ;;  %v174_v32 = vld [vmem:[%s959_s28 + $0x30] sm:$0xff]  ;;  %v175_v36 = vld [vmem:[%s959_s28 + $0x38] sm:$0xff]  ;;  %v176_v40 = vld [vmem:[%s959_s28 + $0x40] sm:$0xff] }
  0x47   : > { %v177_v44 = vld [vmem:[%s959_s28 + $0x48] sm:$0xff]  ;;  %v178_v48 = vld [vmem:[%s959_s28 + $0x50] sm:$0xff]  ;;  %v179_v52 = vld [vmem:[%s959_s28 + $0x58] sm:$0xff] }
  0x48   : > { %v974_v5 = vadd.s32 %v967_v2, %v969_v3  ;;  %v189_v6 = vadd.s32 16, %v969_v3  ;;  %v188_v7 = vadd.s32 8, %v969_v3  ;;  %v190_v8 = vadd.s32 24, %v969_v3  ;;  %v180_v56 = vld [vmem:[%s959_s28 + $0x60] sm:$0xff]  ;;  %v181_v59 = vld [vmem:[%s959_s28 + $0x68] sm:$0xff]  ;;  %v182_v0 = vld [vmem:[%s959_s28 + $0x70] sm:$0xff] }
  0x49   : > { %v191_v9 = vadd.s32 32, %v969_v3  ;;  %v192_v10 = vadd.s32 40, %v969_v3  ;;  %v193_v11 = vadd.s32 48, %v969_v3  ;;  %v194_v19 = vadd.s32 56, %v969_v3  ;;  %v1130_v63 = vld [vmem:[%s1329_s1] sm:$0x1] }
  0x4a   : > { %vm220_vm1 = vcmp.lt.s32.totalorder %v974_v5, 300  ;;  %v985_v13 = vadd.s32 %v967_v2, %v189_v6  ;;  %v989_v15 = vadd.s32 %v967_v2, %v188_v7  ;;  %v992_v16 = vadd.s32 %v967_v2, %v190_v8 }
  0x4b   : > { %v996_v17 = vsel %vm220_vm1, %v168_v4, 0.0  ;;  %v999_v18 = vadd.s32 %v967_v2, %v191_v9  ;;  %v1008_v21 = vadd.s32 %v967_v2, %v192_v10  ;;  %v1022_v25 = vadd.s32 %v967_v2, %v193_v11 }
  0x4c   : > { %284 = vmax.xlane.f32.xlu0 %v996_v17  ;;  %vm222_vm2 = vcmp.lt.s32.totalorder %v985_v13, 300  ;;  %vm221_vm3 = vcmp.lt.s32.totalorder %v989_v15, 300  ;;  %vm223_vm4 = vcmp.lt.s32.totalorder %v992_v16, 300  ;;  %v195_v27 = vadd.s32 64, %v969_v3 }
  0x4d   : > { %v1012_v22 = vsel %vm222_vm2, %v170_v12, 0.0  ;;  %v1016_v23 = vsel %vm221_vm3, %v169_v14, 0.0  ;;  %vm224_vm5 = vcmp.lt.s32.totalorder %v999_v18, 300  ;;  %v1026_v26 = vsel %vm223_vm4, %v171_v20, 0.0 }
  0x4e   : > { %288 = vmax.xlane.f32.xlu1 %v1012_v22  ;;  %vm225_vm6 = vcmp.lt.s32.totalorder %v1008_v21, 300  ;;  %v1033_v29 = vadd.s32 %v967_v2, %v194_v19  ;;  %v196_v30 = vadd.s32 72, %v969_v3  ;;  %v1038_v31 = vsel %vm224_vm5, %v172_v24, 0.0 }
  0x4f   : > { %vm226_vm7 = vcmp.lt.s32.totalorder %v1022_v25, 300  ;;  %v1044_v33 = vadd.s32 %v967_v2, %v195_v27  ;;  %v197_v34 = vadd.s32 80, %v969_v3  ;;  %v1049_v35 = vsel %vm225_vm6, %v173_v28, 0.0 }
  0x50   : > { %286 = vmax.xlane.f32.xlu0 %v1016_v23  ;;  %vm227_vm8 = vcmp.lt.s32.totalorder %v1033_v29, 300  ;;  %v1055_v37 = vadd.s32 %v967_v2, %v196_v30  ;;  %v198_v38 = vadd.s32 88, %v969_v3  ;;  %v1060_v39 = vsel %vm226_vm7, %v174_v32, 0.0 }
  0x51   : > { %vm228_vm9 = vcmp.lt.s32.totalorder %v1044_v33, 300  ;;  %v1066_v41 = vadd.s32 %v967_v2, %v197_v34  ;;  %v199_v42 = vadd.s32 96, %v969_v3  ;;  %v1071_v43 = vsel %vm227_vm8, %v175_v36, 0.0 }
  0x52   : > { %290 = vmax.xlane.f32.xlu1 %v1026_v26  ;;  %vm229_vm10 = vcmp.lt.s32.totalorder %v1055_v37, 300  ;;  %v1077_v45 = vadd.s32 %v967_v2, %v198_v38  ;;  %v200_v46 = vadd.s32 104, %v969_v3  ;;  %v1082_v47 = vsel %vm228_vm9, %v176_v40, 0.0 }
  0x53   : > { %vm230_vm11 = vcmp.lt.s32.totalorder %v1066_v41, 300  ;;  %v1088_v49 = vadd.s32 %v967_v2, %v199_v42  ;;  %v201_v50 = vadd.s32 112, %v969_v3  ;;  %v1093_v51 = vsel %vm229_vm10, %v177_v44, 0.0 }
  0x54   : > { %292 = vmax.xlane.f32.xlu0 %v1038_v31  ;;  %vm231_vm12 = vcmp.lt.s32.totalorder %v1077_v45, 300  ;;  %v1099_v53 = vadd.s32 %v967_v2, %v200_v46  ;;  %v202_v54 = vadd.s32 120, %v969_v3  ;;  %v1104_v55 = vsel %vm230_vm11, %v178_v48, 0.0 }
  0x55   : > { %vm232_vm13 = vcmp.lt.s32.totalorder %v1088_v49, 300  ;;  %v1110_v57 = vadd.s32 %v967_v2, %v201_v50  ;;  %v1114_v58 = vsel %vm231_vm12, %v179_v52, 0.0  ;;  %v463_v61 = vsub.s32 0, %v969_v3 }
  0x56   : > { %294 = vmax.xlane.f32.xlu1 %v1049_v35  ;;  %vm233_vm14 = vcmp.lt.s32.totalorder %v1099_v53, 300  ;;  %v1120_v60 = vadd.s32 %v967_v2, %v202_v54  ;;  %v1125_v62 = vsel %vm232_vm13, %v180_v56, 0.0  ;;  %v183_v2 = vld [vmem:[%s959_s28 + $0x78] sm:$0xff] }
  0x57   : > { %vm234_vm15 = vcmp.lt.s32.totalorder %v1110_v57, 300  ;;  %v1137_v1 = vsel %vm233_vm14, %v181_v59, 0.0  ;;  %v1143_v3 = vrot.slane %v1130_v63, %v463_v61 }
  0x58   : > { %296 = vmax.xlane.f32.xlu0 %v1060_v39  ;;  %vm235_vm0 = vcmp.lt.s32.totalorder %v1120_v60, 300  ;;  %v1147_v4 = vsel %vm234_vm15, %v182_v0, 0.0 }
  0x59   : > { %v1152_v6 = vsel %vm235_vm0, %v183_v2, 0.0  ;;  %v467_v7 = vmul.f32 %v1143_v3, %v1016_v23  ;;  %v466_v8 = vmul.f32 %v1143_v3, %v996_v17  ;;  %v468_v9 = vmul.f32 %v1143_v3, %v1012_v22 }
  0x5a   : > { %298 = vmax.xlane.f32.xlu1 %v1071_v43  ;;  %v469_v10 = vmul.f32 %v1143_v3, %v1026_v26 }
  0x5c   : > { %300 = vmax.xlane.f32.xlu0 %v1082_v47 }
  0x5e   : > { %302 = vmax.xlane.f32.xlu1 %v1093_v51 }
  0x60   : > { %304 = vmax.xlane.f32.xlu0 %v1104_v55 }
  0x62   : > { %306 = vmax.xlane.f32.xlu1 %v1114_v58 }
  0x64   : > { %308 = vmax.xlane.f32.xlu0 %v1125_v62 }
  0x66   : > { %310 = vmax.xlane.f32.xlu1 %v1137_v1 }
  0x68   : > { %312 = vmax.xlane.f32.xlu0 %v1147_v4 }
  0x6a   : > { %314 = vmax.xlane.f32.xlu1 %v1152_v6 }
  0x6c   : > { %484 = vadd.xlane.f32.xlu0 %v467_v7 }
  0x6e   : > { %482 = vadd.xlane.f32.xlu1 %v466_v8 }
  0x70   : > { %486 = vadd.xlane.f32.xlu0 %v468_v9 }
  0x74   : > { %488 = vadd.xlane.f32.xlu0 %v469_v10 }
  0xd5   : > { %v1164_v11 = vpop.xlane.xlu0 %284 }
  0xd6   : > { %v316_v12 = vsub.f32 %v996_v17, %v1164_v11 }
  0xd7   : > { %v1168_v14 = vpop.xlane.xlu1 %288 }
  0xd8   : > { %v332_v19 = vmul.f32 1.442695, %v316_v12  ;;  %v318_v20 = vsub.f32 %v1012_v22, %v1168_v14 }
  0xd9   : > { %v1172_v24 = vpop.xlane.xlu0 %286 }
  0xda   : > { %713 = vpow2.f32 %v332_v19  ;;  %v336_v27 = vmul.f32 1.442695, %v318_v20  ;;  %v317_v28 = vsub.f32 %v1016_v23, %v1172_v24 }
  0xdb   : > { %v1176_v30 = vpop.xlane.xlu1 %290 }
  0xdc   : > { %715 = vpow2.f32 %v336_v27  ;;  %v334_v32 = vmul.f32 1.442695, %v317_v28  ;;  %v319_v17 = vsub.f32 %v1026_v26, %v1176_v30 }
  0xdd   : > { %v1180_v34 = vpop.xlane.xlu0 %292 }
  0xde   : > { %717 = vpow2.f32 %v334_v32  ;;  %v338_v36 = vmul.f32 1.442695, %v319_v17  ;;  %v320_v22 = vsub.f32 %v1038_v31, %v1180_v34 }
  0xdf   : > { %v1184_v38 = vpop.xlane.xlu1 %294 }
  0xe0   : > { %719 = vpow2.f32 %v338_v36  ;;  %v340_v40 = vmul.f32 1.442695, %v320_v22  ;;  %v321_v23 = vsub.f32 %v1049_v35, %v1184_v38 }
  0xe1   : > { %v1188_v42 = vpop.xlane.xlu0 %296 }
  0xe2   : > { %721 = vpow2.f32 %v340_v40  ;;  %v342_v44 = vmul.f32 1.442695, %v321_v23  ;;  %v322_v26 = vsub.f32 %v1060_v39, %v1188_v42 }
  0xe3   : > { %v1192_v46 = vpop.xlane.xlu1 %298 }
  0xe4   : > { %723 = vpow2.f32 %v342_v44  ;;  %v344_v48 = vmul.f32 1.442695, %v322_v26  ;;  %v323_v50 = vsub.f32 %v1071_v43, %v1192_v46 }
  0xe5   : > { %v1196_v52 = vpop.xlane.xlu0 %300 }
  0xe6   : > { %725 = vpow2.f32 %v344_v48  ;;  %v346_v54 = vmul.f32 1.442695, %v323_v50  ;;  %v324_v56 = vsub.f32 %v1082_v47, %v1196_v52 }
  0xe7   : > { %v714_v59 = vpop.eup %713  ;;  %v1200_v61 = vpop.xlane.xlu1 %302 }
  0xe8   : > { %727 = vpow2.f32 %v346_v54  ;;  %v348_v0 = vmul.f32 1.442695, %v324_v56  ;;  %364 = vadd.xlane.f32.xlu0 %v714_v59  ;;  %v325_v2 = vsub.f32 %v1093_v51, %v1200_v61 }
  0xe9   : > { %v716_v7 = vpop.eup %715  ;;  %v1204_v8 = vpop.xlane.xlu0 %304 }
  0xea   : > { %729 = vpow2.f32 %v348_v0  ;;  %v350_v9 = vmul.f32 1.442695, %v325_v2  ;;  %v326_v10 = vsub.f32 %v1104_v55, %v1204_v8 }
  0xeb   : > { %v718_v12 = vpop.eup %717  ;;  %v1208_v19 = vpop.xlane.xlu1 %306 }
  0xec   : > { %731 = vpow2.f32 %v350_v9  ;;  %v352_v20 = vmul.f32 1.442695, %v326_v10  ;;  %368 = vadd.xlane.f32.xlu0 %v716_v7  ;;  %366 = vadd.xlane.f32.xlu1 %v718_v12  ;;  %v327_v27 = vsub.f32 %v1114_v58, %v1208_v19 }
  0xed   : > { %v720_v28 = vpop.eup %719  ;;  %v1212_v32 = vpop.xlane.xlu0 %308 }
  0xee   : > { %733 = vpow2.f32 %v352_v20  ;;  %v354_v17 = vmul.f32 1.442695, %v327_v27  ;;  %v328_v36 = vsub.f32 %v1125_v62, %v1212_v32  ;;  %v470_v27 = vmul.f32 %v1143_v3, %v1038_v31 }
  0xef   : > { %v722_v22 = vpop.eup %721  ;;  %v1216_v40 = vpop.xlane.xlu1 %310 }
  0xf0   : > { %735 = vpow2.f32 %v354_v17  ;;  %372 = vadd.xlane.f32.xlu0 %v722_v22  ;;  %370 = vadd.xlane.f32.xlu1 %v720_v28  ;;  %v356_v23 = vmul.f32 1.442695, %v328_v36  ;;  %v329_v44 = vsub.f32 %v1137_v1, %v1216_v40  ;;  %v471_v17 = vmul.f32 %v1143_v3, %v1049_v35 }
  0xf1   : > { %v724_v26 = vpop.eup %723  ;;  %v1220_v48 = vpop.xlane.xlu0 %312  ;;  %v472_v22 = vmul.f32 %v1143_v3, %v1060_v39  ;;  %v473_v35 = vmul.f32 %v1143_v3, %v1071_v43  ;;  %v478_v39 = vmul.f32 %v1143_v3, %v1125_v62  ;;  %v479_v43 = vmul.f32 %v1143_v3, %v1137_v1 }
  0xf2   : > { %737 = vpow2.f32 %v356_v23  ;;  %v358_v54 = vmul.f32 1.442695, %v329_v44  ;;  %v330_v56 = vsub.f32 %v1147_v4, %v1220_v48  ;;  %v474_v44 = vmul.f32 %v1143_v3, %v1082_v47 }
  0xf3   : > { %v726_v50 = vpop.eup %725  ;;  %v1224_v0 = vpop.xlane.xlu1 %314  ;;  %v480_v47 = vmul.f32 %v1143_v3, %v1147_v4  ;;  %v481_v62 = vmul.f32 %v1143_v3, %v1152_v6 }
  0xf4   : > { %376 = vadd.xlane.f32.xlu0 %v726_v50  ;;  %374 = vadd.xlane.f32.xlu1 %v724_v26  ;;  %739 = vpow2.f32 %v358_v54  ;;  %v360_v7 = vmul.f32 1.442695, %v330_v56  ;;  %v331_v9 = vsub.f32 %v1152_v6, %v1224_v0  ;;  %v476_v26 = vmul.f32 %v1143_v3, %v1104_v55 }
  0xf5   : > { %v728_v59 = vpop.eup %727  ;;  %v475_v54 = vmul.f32 %v1143_v3, %v1093_v51  ;;  %v477_v55 = vmul.f32 %v1143_v3, %v1114_v58  ;;  %v485_v56 = vpop.xlane.xlu0 %484 }
  0xf6   : > { %741 = vpow2.f32 %v360_v7  ;;  %v362_v20 = vmul.f32 1.442695, %v331_v9 }
  0xf7   : > { %v730_v2 = vpop.eup %729  ;;  %v483_v4 = vpop.xlane.xlu1 %482 }
  0xf8   : > { %380 = vadd.xlane.f32.xlu0 %v730_v2  ;;  %378 = vadd.xlane.f32.xlu1 %v728_v59  ;;  %743 = vpow2.f32 %v362_v20 }
  0xf9   : > { %v732_v10 = vpop.eup %731  ;;  %v1252_v51 = vpop.xlane.xlu0 %486 }
  0xfb   : > { %v734_v12 = vpop.eup %733 }
  0xfc   : > { %384 = vadd.xlane.f32.xlu0 %v734_v12  ;;  %382 = vadd.xlane.f32.xlu1 %v732_v10 }
  0xfd   : > { %v736_v28 = vpop.eup %735  ;;  %v1254_v59 = vpop.xlane.xlu0 %488 }
  0xff   : > { %v738_v36 = vpop.eup %737 }
 0x100   : > { %490 = vadd.xlane.f32.xlu0 %v470_v27  ;;  %386 = vadd.xlane.f32.xlu1 %v736_v28 }
 0x101   : > { %v740_v23 = vpop.eup %739 }
 0x103   : > { %v742_v31 = vpop.eup %741 }
 0x104   : > { %492 = vadd.xlane.f32.xlu0 %v471_v17  ;;  %388 = vadd.xlane.f32.xlu1 %v738_v36 }
 0x105   : > { %v744_v50 = vpop.eup %743 }
 0x108   : > { %494 = vadd.xlane.f32.xlu0 %v472_v22  ;;  %390 = vadd.xlane.f32.xlu1 %v740_v23 }
 0x10c   : > { %392 = vadd.xlane.f32.xlu1 %v742_v31  ;;  %498 = vadd.xlane.f32.xlu0 %v474_v44 }
 0x110   : > { %394 = vadd.xlane.f32.xlu1 %v744_v50  ;;  %502 = vadd.xlane.f32.xlu0 %v476_v26 }
 0x114   : > { %496 = vadd.xlane.f32.xlu1 %v473_v35  ;;  %506 = vadd.xlane.f32.xlu0 %v478_v39 }
 0x118   : > { %500 = vadd.xlane.f32.xlu1 %v475_v54  ;;  %510 = vadd.xlane.f32.xlu0 %v480_v47 }
 0x11c   : > { %504 = vadd.xlane.f32.xlu1 %v477_v55 }
 0x120   : > { %508 = vadd.xlane.f32.xlu1 %v479_v43 }
 0x124   : > { %512 = vadd.xlane.f32.xlu1 %v481_v62 }
 0x171   : > { %v365_v2 = vpop.xlane.xlu0 %364 }
 0x172   : > { %745 = vlog2.f32 %v365_v2 }
 0x175   : > { %v369_v7 = vpop.xlane.xlu0 %368  ;;  %v367_v58 = vpop.xlane.xlu1 %366 }
 0x176   : > { %747 = vlog2.f32 %v369_v7 }
 0x177   : > { %749 = vlog2.f32 %v367_v58 }
 0x179   : > { %v373_v9 = vpop.xlane.xlu0 %372  ;;  %v371_v10 = vpop.xlane.xlu1 %370 }
 0x17a   : > { %751 = vlog2.f32 %v373_v9 }
 0x17b   : > { %753 = vlog2.f32 %v371_v10 }
 0x17d   : > { %v377_v1 = vpop.xlane.xlu0 %376  ;;  %v375_v12 = vpop.xlane.xlu1 %374 }
 0x17e   : > { %755 = vlog2.f32 %v377_v1 }
 0x17f   : > { %v746_v3 = vpop.eup %745  ;;  %757 = vlog2.f32 %v375_v12 }
 0x180   : > { %v397_v6 = vmul.f32 0.6931472, %v746_v3 }
 0x181   : > { %v381_v20 = vpop.xlane.xlu0 %380  ;;  %v379_v27 = vpop.xlane.xlu1 %378 }
 0x182   : > { %759 = vlog2.f32 %v381_v20  ;;  %v428_v22 = vadd.f32 %v397_v6, %v1164_v11  ;;  %v515_v6 = vadd.f32 %v485_v56, %v483_v4 }
 0x183   : > { %v748_v28 = vpop.eup %747  ;;  %761 = vlog2.f32 %v379_v27 }
 0x184   : > { %v750_v17 = vpop.eup %749  ;;  %v401_v36 = vmul.f32 0.6931472, %v748_v28  ;;  %v444_v47 = vsel %vm220_vm1, %v428_v22, 0.0  ;;  %v516_v56 = vadd.f32 %v515_v6, %v1252_v51  ;;  %vm537_vm1 = vcmask 0  }
 0x185   : > { %v399_v23 = vmul.f32 0.6931472, %v750_v17  ;;  %v385_v44 = vpop.xlane.xlu0 %384  ;;  %v383_v31 = vpop.xlane.xlu1 %382 }
 0x186   : > { %v430_v50 = vadd.f32 %v401_v36, %v1168_v14  ;;  %763 = vlog2.f32 %v383_v31  ;;  %v517_v51 = vadd.f32 %v516_v56, %v1254_v59 }
 0x187   : > { %v752_v26 = vpop.eup %751  ;;  %v429_v35 = vadd.f32 %v399_v23, %v1172_v24  ;;  %765 = vlog2.f32 %v385_v44 }
 0x188   : > { %v754_v39 = vpop.eup %753  ;;  %v405_v54 = vmul.f32 0.6931472, %v752_v26  ;;  %v446_v14 = vsel %vm222_vm2, %v430_v50, 0.0 }
 0x189   : > { %v445_v55 = vsel %vm221_vm3, %v429_v35, 0.0  ;;  %v403_v43 = vmul.f32 0.6931472, %v754_v39  ;;  %v491_v11 = vpop.xlane.xlu0 %490  ;;  %v387_v62 = vpop.xlane.xlu1 %386 }
 0x18a   : > { %v540_v2 = vadd.f32 %v445_v55, %v444_v47  ;;  %767 = vlog2.f32 %v387_v62  ;;  %v432_v24 = vadd.f32 %v405_v54, %v1180_v34 }
 0x18b   : > { %v756_v7 = vpop.eup %755  ;;  %v431_v58 = vadd.f32 %v403_v43, %v1176_v30 }
 0x18c   : > { %v758_v9 = vpop.eup %757  ;;  %v541_v10 = vadd.f32 %v540_v2, %v446_v14  ;;  %v409_v5 = vmul.f32 0.6931472, %v756_v7  ;;  %v448_v13 = vsel %vm224_vm5, %v432_v24, 0.0 }
 0x18d   : > { %v447_v15 = vsel %vm223_vm4, %v431_v58, 0.0  ;;  %v407_v1 = vmul.f32 0.6931472, %v758_v9  ;;  %v493_v12 = vpop.xlane.xlu0 %492  ;;  %v389_v3 = vpop.xlane.xlu1 %388 }
 0x18e   : > { %v542_v20 = vadd.f32 %v541_v10, %v447_v15  ;;  %769 = vlog2.f32 %v389_v3  ;;  %v434_v34 = vadd.f32 %v409_v5, %v1188_v42 }
 0x18f   : > { %v760_v27 = vpop.eup %759  ;;  %v433_v30 = vadd.f32 %v407_v1, %v1184_v38 }
 0x190   : > { %v762_v28 = vpop.eup %761  ;;  %v543_v17 = vadd.f32 %v542_v20, %v448_v13  ;;  %v413_v36 = vmul.f32 0.6931472, %v760_v27  ;;  %v450_v18 = vsel %vm226_vm7, %v434_v34, 0.0 }
 0x191   : > { %v449_v16 = vsel %vm225_vm6, %v433_v30, 0.0  ;;  %v411_v22 = vmul.f32 0.6931472, %v762_v28  ;;  %v391_v23 = vpop.xlane.xlu1 %390  ;;  %v495_v42 = vpop.xlane.xlu0 %494 }
 0x192   : > { %v544_v4 = vadd.f32 %v543_v17, %v449_v16  ;;  %771 = vlog2.f32 %v391_v23  ;;  %v436_v38 = vadd.f32 %v413_v36, %v1196_v52  ;;  %v518_v52 = vadd.f32 %v517_v51, %v491_v11 }
 0x193   : > { %v435_v44 = vadd.f32 %v411_v22, %v1192_v46  ;;  %v764_v31 = vpop.eup %763 }
 0x194   : > { %v545_v26 = vadd.f32 %v544_v4, %v450_v18  ;;  %v766_v50 = vpop.eup %765  ;;  %v415_v35 = vmul.f32 0.6931472, %v764_v31  ;;  %v452_v46 = vsel %vm228_vm9, %v436_v38, 0.0  ;;  %v519_v14 = vadd.f32 %v518_v52, %v493_v12 }
 0x195   : > { %v451_v21 = vsel %vm227_vm8, %v435_v44, 0.0  ;;  %v393_v39 = vpop.xlane.xlu1 %392  ;;  %v499_v55 = vpop.xlane.xlu0 %498  ;;  %v417_v43 = vmul.f32 0.6931472, %v766_v50 }
 0x196   : > { %v546_v54 = vadd.f32 %v545_v26, %v451_v21  ;;  %773 = vlog2.f32 %v393_v39  ;;  %v437_v25 = vadd.f32 %v415_v35, %v1200_v61  ;;  %v520_v9 = vadd.f32 %v519_v14, %v495_v42 }
 0x197   : > { %v768_v47 = vpop.eup %767  ;;  %v438_v59 = vadd.f32 %v417_v43, %v1204_v8  ;;  %v539_v43 = vld [vmem:[#allocation3] sm:$0x1] }
 0x198   : > { %v547_v62 = vadd.f32 %v546_v54, %v452_v46  ;;  %v453_v29 = vsel %vm229_vm10, %v437_v25, 0.0  ;;  %v419_v7 = vmul.f32 0.6931472, %v768_v47 }
 0x199   : > { %v395_v2 = vpop.xlane.xlu1 %394  ;;  %v503_v5 = vpop.xlane.xlu0 %502  ;;  %v454_v1 = vsel %vm230_vm11, %v438_v59, 0.0 }
 0x19a   : > { %775 = vlog2.f32 %v395_v2  ;;  %v548_v61 = vadd.f32 %v547_v62, %v453_v29  ;;  %v439_v33 = vadd.f32 %v419_v7, %v1208_v19  ;;  %v514_v62 = vld [vmem:[#allocation2] sm:$0x1] }
 0x19b   : > { %v770_v24 = vpop.eup %769 }
 0x19c   : > { %v421_v58 = vmul.f32 0.6931472, %v770_v24  ;;  %v549_v6 = vadd.f32 %v548_v61, %v454_v1  ;;  %v455_v8 = vsel %vm231_vm12, %v439_v33, 0.0 }
 0x19d   : > { %v497_v10 = vpop.xlane.xlu1 %496  ;;  %v507_v30 = vpop.xlane.xlu0 %506 }
 0x19e   : > { %v521_v15 = vadd.f32 %v520_v9, %v497_v10  ;;  %v440_v37 = vadd.f32 %v421_v58, %v1212_v32  ;;  %v550_v17 = vadd.f32 %v549_v6, %v455_v8 }
 0x19f   : > { %v772_v11 = vpop.eup %771 }
 0x1a0   : > { %v423_v3 = vmul.f32 0.6931472, %v772_v11  ;;  %v522_v12 = vadd.f32 %v521_v15, %v499_v55  ;;  %v456_v19 = vsel %vm232_vm13, %v440_v37, 0.0 }
 0x1a1   : > { %v501_v20 = vpop.xlane.xlu1 %500  ;;  %v551_v23 = vadd.f32 %v550_v17, %v456_v19  ;;  %v511_v44 = vpop.xlane.xlu0 %510 }
 0x1a2   : > { %v441_v27 = vadd.f32 %v423_v3, %v1216_v40  ;;  %v523_v13 = vadd.f32 %v522_v12, %v501_v20 }
 0x1a3   : > { %v774_v34 = vpop.eup %773 }
 0x1a4   : > { %v425_v28 = vmul.f32 0.6931472, %v774_v34  ;;  %v524_v41 = vadd.f32 %v523_v13, %v503_v5  ;;  %v457_v32 = vsel %vm233_vm14, %v441_v27, 0.0 }
 0x1a5   : > { %v505_v36 = vpop.xlane.xlu1 %504  ;;  %v552_v18 = vadd.f32 %v551_v23, %v457_v32 }
 0x1a6   : > { %v442_v16 = vadd.f32 %v425_v28, %v1220_v48  ;;  %v525_v22 = vadd.f32 %v524_v41, %v505_v36 }
 0x1a7   : > { %v776_v45 = vpop.eup %775 }
 0x1a8   : > { %v458_v40 = vsel %vm234_vm15, %v442_v16, 0.0  ;;  %v427_v56 = vmul.f32 0.6931472, %v776_v45  ;;  %v526_v4 = vadd.f32 %v525_v22, %v507_v30 }
 0x1a9   : > { %v509_v49 = vpop.xlane.xlu1 %508  ;;  %v553_v38 = vadd.f32 %v552_v18, %v458_v40 }
 0x1aa   : > { %v443_v42 = vadd.f32 %v427_v56, %v1224_v0  ;;  %v527_v31 = vadd.f32 %v526_v4, %v509_v49 }
 0x1ac   : > { %v459_v53 = vsel %vm235_vm0, %v443_v42, 0.0  ;;  %v528_v26 = vadd.f32 %v527_v31, %v511_v44 }
 0x1ad   : > { %v554_v48 = vadd.f32 %v553_v38, %v459_v53  ;;  %v513_v50 = vpop.xlane.xlu1 %512 }
 0x1ae   : > { %v529_v21 = vadd.f32 %v528_v26, %v513_v50 }
 0x1af   : > { %v555_v35 = vrot.slane %v554_v48, 4 }
 0x1b0   : > { %v530_v39 = vrot.slane %v529_v21, 4 }
 0x1b1   : > { %v556_v57 = vadd.f32 %v555_v35, %v554_v48 }
 0x1b2   : > { %v531_v54 = vadd.f32 %v530_v39, %v529_v21 }
 0x1b3   : > { %v557_v51 = vrot.slane %v556_v57, 2 }
 0x1b4   : > { %v532_v47 = vrot.slane %v531_v54, 2 }
 0x1b5   : > { %v558_v25 = vadd.f32 %v557_v51, %v556_v57 }
 0x1b6   : > { %v533_v55 = vadd.f32 %v532_v47, %v531_v54 }
 0x1b7   : > { %v559_v46 = vrot.slane %v558_v25, 1 }
 0x1b8   : > { %v534_v0 = vrot.slane %v533_v55, 1 }
 0x1b9   : > { %v560_v52 = vadd.f32 %v559_v46, %v558_v25 }
 0x1ba   : > { %v535_v60 = vadd.f32 %v534_v0, %v533_v55  ;;  %566 = sbr.rel (%p662_p6) target bundleno = 662 (0x296), region = 40 }
 0x1bb   : > { %v561_v2 = vadd.f32 %v560_v52, %v539_v43 }
 0x1bc   : > { %v536_v29 = vadd.f32 %v535_v60, %v514_v62 }
 0x1bd   : > { %562 = vst.msk [vmem:[#allocation3] sm:$0x1] %vm537_vm1, %v561_v2 }
 0x1be   : > { %538 = vst.msk [vmem:[#allocation2] sm:$0x1] %vm537_vm1, %v536_v29 }
 0x1bf   : > { %vm567_vm2 = vcmask 1040384   ;;  %vm571_vm3 = vcmp.gt.f32.partialorder %v1130_v63, 0.0 }
 0x1c0   : > { %v568_v7 = vsel %vm567_vm2, %v1130_v63, 0.0  ;;  %v572_v14 = vsel %vm571_vm3, %v1130_v63, 1.0 }
 0x1c1   : > { %569 = vadd.xlane.f32.xlu0 %v568_v7  ;;  %777 = vlog2.f32 %v572_v14 }
 0x1c4   : > { %v581_v10 = vld [vmem:[#allocation3] sm:$0x1] }
 0x1c5   : > { %v580_v15 = vld [vmem:[#allocation2] sm:$0x1] }
 0x1ce   : > { %v778_v24 = vpop.eup %777 }
 0x1cf   : > { %v574_v59 = vmul.f32 0.6931472, %v778_v24 }
 0x1d1   : > { %v575_v58 = vmul.f32 %v574_v59, %v1130_v63 }
 0x1d3   : > { %v576_v9 = vsel %vm571_vm3, %v575_v58, 0.0 }
 0x1d4   : > { %v577_v61 = vsel %vm567_vm2, %v576_v9, 0.0 }
 0x1d5   : > { %578 = vadd.xlane.f32.xlu0 %v577_v61 }
 0x24a   : > { %v570_v5 = vpop.xlane.xlu0 %569 }
 0x24b   : > { %v582_v33 = vmul.f32 %v581_v10, %v570_v5 }
 0x24d   : > { %v583_v11 = vsub.f32 %v580_v15, %v582_v33 }
 0x24f   : > { %v585_v1 = vmul.f32 0.0033333334, %v583_v11 }
 0x25e   : > { %v579_v37 = vpop.xlane.xlu0 %578 }
 0x25f   : > { %v586_v3 = vsub.f32 %v579_v37, %v585_v1 }
 0x261   : > { %v588_v12 = vmul.f32 0.0078125, %v586_v3 }
 0x263   : > { %668 = vpush %v588_v12 }
 0x294   : > { %s669_s25 = spop %668 }
 0x295   : > { %591 = sst [smem:[#allocation7]] %s669_s25 }
 0x296 PF: > { %p675_p1 = scmp.eq.s32.totalorder %s894_s13, 2  ;;  %s859_s29 = smov [#allocation7]  }
 0x298   : > { %672 = dma.smem_to_hbm (%p675_p1), %s859_s29, 16, %s1330_s2, [#allocation6]  }
 0x299   : > { %836 = dma.done.wait (%p675_p1), [#allocation6], 16  }
 0x29a   : > { %838 = vsyncadd (%p675_p1), [#allocation6], 4294967280 }
 0x29b   : > { %605 = sfence }
 0x29c PF: > { %p13_p2 = scmp.ge.s32.totalorder %s897_s14, 5   ;;  %s1332_s9 = smov %s845_s10 }
 0x29d   : > { %s1333_s10 = smov %s849_s11  ;;  %s1334_s11 = smov %s907_s17 }
 0x29e   : > { %s1335_s12 = smov %s897_s14  ;;  %15 = sbr.rel (!%p13_p2) target bundleno = 4 (0x4), region = 74 }
 0x2a3   :  { %611 = vsyncpa [#allocation5], 1 }
 0x2a4   :  { %613 = vsyncpa [#allocation5 + $0x1], 1 }
 0x2a5   :  { %614 = vsyncpa [#allocation6], 1 }
 0x2a6   :  { %616 = vsyncpa [#allocation6 + $0x1], 1 }

</bundles_post_ra>
